<compile_context>
chip_gen: v6e
topology: v6e:2x2x1
jax: 0.10.0
libtpu: 0.0.40
codegen_flags: <defaults>
</compile_context>

<pallas_src>
import functools
import math

import jax
import jax.numpy as jnp
import numpy as np
from jax.experimental import pallas as pl
from jax.experimental.pallas import tpu as pltpu


def _default_vmem_limit():
    # Buffers here are only a few MiB; never request more than half of physical
    # VMEM (v7x: 64 MiB physical vs 128 MiB on v5e/v6e).
    try:
        cap = pltpu.get_tpu_info().vmem_capacity_bytes
    except Exception:
        cap = 64 * 1024 * 1024
    return int(min(cap // 2, 32 * 1024 * 1024))


_VMEM_LIMIT = _default_vmem_limit()


# ----------------------------------------------------------------------------
# Pallas kernels
# ----------------------------------------------------------------------------

def _dual_linear_kernel(x_ref, w_ref, h1p_ref, xh2_ref):
    # fused ELinear_h1_2_h1p + ELinear_h1_2_h2: one (TN, C) @ (C, 2C) bf16 matmul
    res = jnp.dot(x_ref[...], w_ref[...], preferred_element_type=jnp.float32)
    c = h1p_ref.shape[-1]
    h1p_ref[...] = res[:, :c].astype(h1p_ref.dtype)   # bf16 (feeds the edge gather)
    xh2_ref[...] = res[:, c:].astype(xh2_ref.dtype)   # f32


def _edge_kernel(blk_ref, cnt_ref,                     # scalar prefetch (SMEM)
                 elen_ref, h1pg_ref, rloc_ref,
                 wr_ref, br_ref, wr3_ref, br3_ref,
                 o_ref, *, tile_nodes):
    """Fused radial MLP + edge tensor product + receiver-tile scatter-sum."""
    i = pl.program_id(0)
    prev = blk_ref[jnp.maximum(i - 1, 0)]
    first = jnp.logical_or(i == 0, blk_ref[i] != prev)

    @pl.when(first)
    def _():                                   # first edge tile for this node tile
        o_ref[...] = jnp.zeros_like(o_ref)

    @pl.when(cnt_ref[i] > 0)                   # skip all-padding tiles entirely
    def _():
        # ResMLP radial net (hidden->hidden->hidden->C); bf16 MXU operands,
        # f32 accumulation, f32 SiLU/residuals on the VPU/EUP.
        x = elen_ref[...]                                               # (TE, HID) bf16
        h = jax.nn.silu(jnp.dot(x, wr_ref[0],
                                preferred_element_type=jnp.float32) + br_ref[0])
        h = jax.nn.silu(jnp.dot(h.astype(jnp.bfloat16), wr_ref[1],
                                preferred_element_type=jnp.float32) + br_ref[1]) + h
        h = jax.nn.silu(jnp.dot(h.astype(jnp.bfloat16), wr_ref[2],
                                preferred_element_type=jnp.float32) + br_ref[2]) + h
        rl = jnp.dot(h.astype(jnp.bfloat16), wr3_ref[...],
                     preferred_element_type=jnp.float32) + br3_ref[...]  # (TE, C)

        # channelwise 0e x 0e x 0e tensor product; sph and 1/avg_num_neighbors
        # were folded into h1pg in the wrapper.
        msg = (h1pg_ref[...].astype(jnp.float32) * rl).astype(jnp.bfloat16)   # (TE, C)

        # in-tile scatter: transposed local one-hot (TN, TE) -> straight MXU dot,
        # no LHS transpose.  Pad columns have rloc == tile_nodes -> all-zero.
        te = msg.shape[0]
        iota = jax.lax.broadcasted_iota(jnp.int32, (tile_nodes, te), 0)
        oh_t = (rloc_ref[...] == iota).astype(jnp.bfloat16)                   # (TN, TE)
        o_ref[...] += jnp.dot(oh_t, msg, preferred_element_type=jnp.float32)


def _node_update_kernel(msgA_ref, attrsrep_ref, xh2_ref, wsym_ref,
                        wmixT_ref, wm2h2_ref, o_ref, *, nu_max, z_dim):
    a = msgA_ref[...]                                                  # (TR, C) f32
    tr, c = a.shape

    # ELinear_A_mixing: one wide bf16 matmul (TR, C) @ (C, Z*C), then a
    # lane-aligned combine with the pre-expanded attrs mask (pure VPU FMAs).
    mixed = jnp.dot(a.astype(jnp.bfloat16), wmixT_ref[...],
                    preferred_element_type=jnp.float32)                # (TR, Z*C)
    prod = mixed * attrsrep_ref[...]
    lin_a = jnp.zeros((tr, c), jnp.float32)
    for zz in range(z_dim):
        lin_a = lin_a + prod[:, zz * c:(zz + 1) * c]

    # SymmetricContraction (scalar irreps); per-node weights gathered in wrapper.
    wsel = wsym_ref[...]                                               # (TR, NU*C) f32
    b = jnp.zeros((tr, c), jnp.float32)
    p = jnp.ones((tr, c), jnp.float32)
    for v in range(nu_max):
        p = p * lin_a
        b = b + wsel[:, v * c:(v + 1) * c] * p

    # node_feature_out = ELinear_h1_2_h2(h1) [xh2] + ELinear_m2_2_h2(B)
    out = xh2_ref[...] + jnp.dot(b.astype(jnp.bfloat16), wm2h2_ref[...],
                                 preferred_element_type=jnp.float32)
    o_ref[...] = out.astype(o_ref.dtype)


# ----------------------------------------------------------------------------
# Wrappers (glue)
# ----------------------------------------------------------------------------

def fused_node_linears(x_bf16, w_cat_bf16, *, tile_rows):
    n, cin = x_bf16.shape
    c = w_cat_bf16.shape[1] // 2
    return pl.pallas_call(
        _dual_linear_kernel,
        out_shape=(jax.ShapeDtypeStruct((n, c), jnp.bfloat16),     # h1p (gather stream)
                   jax.ShapeDtypeStruct((n, c), jnp.float32)),     # x @ w_h1h2
        grid=(pl.cdiv(n, tile_rows),),
        in_specs=[pl.BlockSpec((tile_rows, cin), lambda i: (i, 0)),
                  pl.BlockSpec((cin, 2 * c), lambda i: (0, 0))],
        out_specs=(pl.BlockSpec((tile_rows, c), lambda i: (i, 0)),
                   pl.BlockSpec((tile_rows, c), lambda i: (i, 0))),
        compiler_params=pltpu.CompilerParams(
            dimension_semantics=("parallel",),
            vmem_limit_bytes=_VMEM_LIMIT),
    )(x_bf16, w_cat_bf16)


def _prepare_edges(sender, receiver, edge_len, edge_sph, n_pad, tile_nodes,
                   tile_edges, hid):
    """Sort edges by receiver and pad so every TE-edge tile maps to one node tile.

    Returns (send_p, rloc_rows, elen_p[bf16, hid cols], sph_p, out_block_id, tile_cnt).
    Pad slots use rloc == tile_nodes (never matches the one-hot) and zero features.
    """
    e = sender.shape[0]
    nnt = n_pad // tile_nodes
    d_len = edge_len.shape[1]
    s_dim = edge_sph.shape[1]

    if e == 0:   # no edges: one all-padding tile per node tile (zero-init only)
        e_cap = nnt * tile_edges
        return (jnp.zeros((e_cap,), jnp.int32),
                jnp.full((nnt, tile_edges), tile_nodes, jnp.int32),
                jnp.zeros((e_cap, hid), jnp.bfloat16),
                jnp.zeros((e_cap, s_dim), jnp.float32),
                jnp.arange(nnt, dtype=jnp.int32),
                jnp.zeros((nnt,), jnp.int32))

    order = jnp.argsort(receiver)
    send_s = sender[order]
    recv_s = receiver[order]
    elen_s = edge_len[order].astype(jnp.float32)
    sph_s = edge_sph[order].astype(jnp.float32)

    tile_of_edge = recv_s // tile_nodes                                   # (E,)
    ones = jnp.ones((e,), jnp.int32)
    cnt = jax.ops.segment_sum(ones, tile_of_edge, num_segments=nnt)      # (nnt,)
    # at least one (possibly all-padding) edge tile per node tile so every
    # output block gets zero-initialized and written
    padded_cnt = jnp.maximum(((cnt + tile_edges - 1) // tile_edges) * tile_edges,
                             tile_edges)
    pad_start = jnp.concatenate([jnp.zeros((1,), jnp.int32),
                                 jnp.cumsum(padded_cnt)[:-1]])
    grp_start = jnp.concatenate([jnp.zeros((1,), jnp.int32),
                                 jnp.cumsum(cnt)[:-1]])
    rank = jnp.arange(e, dtype=jnp.int32) - grp_start[tile_of_edge]
    dest = pad_start[tile_of_edge] + rank                                 # unique slots

    e_cap = (-(-e // tile_edges) + nnt) * tile_edges                      # static capacity
    num_tiles = e_cap // tile_edges

    send_p = jnp.zeros((e_cap,), jnp.int32).at[dest].set(send_s)
    rloc_rows = (jnp.full((e_cap,), tile_nodes, jnp.int32)
                 .at[dest].set(recv_s - tile_of_edge * tile_nodes)
                 .reshape(num_tiles, tile_edges))
    elen_cols = jnp.pad(elen_s, ((0, 0), (0, hid - d_len)))               # lane pad
    elen_p = (jnp.zeros((e_cap, hid), jnp.float32)
              .at[dest].set(elen_cols)
              .astype(jnp.bfloat16))
    sph_p = jnp.zeros((e_cap, s_dim), jnp.float32).at[dest].set(sph_s)

    tile_starts = jnp.arange(num_tiles, dtype=jnp.int32) * tile_edges
    out_block_id = (jnp.searchsorted(pad_start, tile_starts, side='right')
                    .astype(jnp.int32) - 1)                               # non-decreasing
    tile_cnt = jax.ops.segment_sum(ones, dest // tile_edges,
                                   num_segments=num_tiles)                # real edges/tile
    return send_p, rloc_rows, elen_p, sph_p, out_block_id, tile_cnt


def cueq_interaction_forward(params, sender, receiver, indices, node_attrs,
                             node_feature_in, edge_length_embed, edge_sph_embed,
                             *, avg_num_neighbors, tile_edges=256, tile_nodes=128,
                             tile_rows=256):
    n, c = node_feature_in.shape
    z = node_attrs.shape[1]
    nu = params['w_sym'].shape[1] // c
    d_len = edge_length_embed.shape[1]
    hid = params['w_r0'].shape[1]
    assert d_len <= hid, "edge_length_dim must not exceed the radial hidden width"

    # --- pad nodes to a multiple of both node tile sizes -----------------------
    tile_lcm = tile_rows * tile_nodes // math.gcd(tile_rows, tile_nodes)
    n_pad = pl.cdiv(n, tile_lcm) * tile_lcm
    pn = n_pad - n
    x = jnp.pad(node_feature_in, ((0, pn), (0, 0)))
    attrs = jnp.pad(node_attrs, ((0, pn), (0, 0)))
    idx_p = jnp.pad(indices, ((0, pn),))

    # --- 1) fused node linears: x @ [w_h1p | w_h1h2] (bf16 operands) -----------
    w_cat = jnp.concatenate([params['w_h1p'], params['w_h1h2']],
                            axis=1).astype(jnp.bfloat16)
    h1p, xh2 = fused_node_linears(x.astype(jnp.bfloat16), w_cat, tile_rows=tile_rows)

    # --- 2) receiver-sorted, node-tile-padded edge layout -----------------------
    send_p, rloc_rows, elen_p, sph_p, out_blk, tile_cnt = _prepare_edges(
        sender, receiver, edge_length_embed, edge_sph_embed,
        n_pad, tile_nodes, tile_edges, hid)

    # Row gather of sender features with edge_sph and 1/avg_num_neighbors folded
    # in; pad rows are exactly zero (sph == 0).  bf16 halves the dominant stream.
    inv_avg = 1.0 / float(avg_num_neighbors)
    h1p_g = (jnp.take(h1p, send_p, axis=0) * (sph_p * inv_avg)).astype(jnp.bfloat16)

    num_edge_tiles = rloc_rows.shape[0]

    # packed radial-MLP parameters (bf16 weights, f32 biases)
    w_r0_pad = jnp.pad(params['w_r0'], ((0, hid - d_len), (0, 0)))
    wr_pack = jnp.stack([w_r0_pad, params['w_r1'],
                         params['w_r2']]).astype(jnp.bfloat16)          # (3, hid, hid)
    br_pack = jnp.stack([params['b_r0'], params['b_r1'],
                         params['b_r2']]).astype(jnp.float32)           # (3, 1, hid)
    wr3 = params['w_r3'].astype(jnp.bfloat16)                           # (hid, C)
    br3 = params['b_r3'].astype(jnp.float32)                            # (1, C)

    # --- 3+4) fused radial MLP + edge tensor product + scatter ------------------
    message_a = pl.pallas_call(
        functools.partial(_edge_kernel, tile_nodes=tile_nodes),
        out_shape=jax.ShapeDtypeStruct((n_pad, c), jnp.float32),
        grid_spec=pltpu.PrefetchScalarGridSpec(
            num_scalar_prefetch=2,
            grid=(num_edge_tiles,),
            in_specs=[
                pl.BlockSpec((tile_edges, hid), lambda i, blk, cnt: (i, 0)),
                pl.BlockSpec((tile_edges, c), lambda i, blk, cnt: (i, 0)),
                pl.BlockSpec((1, tile_edges), lambda i, blk, cnt: (i, 0)),
                pl.BlockSpec((3, hid, hid), lambda i, blk, cnt: (0, 0, 0)),
                pl.BlockSpec((3, 1, hid), lambda i, blk, cnt: (0, 0, 0)),
                pl.BlockSpec((hid, c), lambda i, blk, cnt: (0, 0)),
                pl.BlockSpec((1, c), lambda i, blk, cnt: (0, 0)),
            ],
            # data-dependent output node tile, driven by the prefetched block map
            out_specs=pl.BlockSpec((tile_nodes, c), lambda i, blk, cnt: (blk[i], 0)),
        ),
        compiler_params=pltpu.CompilerParams(
            dimension_semantics=("arbitrary",),   # sequential accumulation per node tile
            vmem_limit_bytes=_VMEM_LIMIT),
    )(out_blk, tile_cnt, elen_p, h1p_g, rloc_rows, wr_pack, br_pack, wr3, br3)

    # --- 5-7) A mixing + symmetric contraction + output linears -----------------
    wmix_t = (jnp.transpose(params['w_mix'], (1, 0, 2))
              .reshape(c, z * c).astype(jnp.bfloat16))                  # (C, Z*C)
    wm2h2 = params['w_m2h2'].astype(jnp.bfloat16)                       # (C, C)
    wsym_sel = jnp.take(params['w_sym'], idx_p, axis=0)                 # (n_pad, NU*C)
    attrs_rep = jnp.repeat(attrs, c, axis=1)                            # (n_pad, Z*C)

    node_feature_out = pl.pallas_call(
        functools.partial(_node_update_kernel, nu_max=nu, z_dim=z),
        out_shape=jax.ShapeDtypeStruct((n_pad, c), jnp.float32),
        grid=(n_pad // tile_rows,),
        in_specs=[
            pl.BlockSpec((tile_rows, c), lambda i: (i, 0)),        # message_A
            pl.BlockSpec((tile_rows, z * c), lambda i: (i, 0)),    # attrs mask (lane-aligned)
            pl.BlockSpec((tile_rows, c), lambda i: (i, 0)),        # x @ w_h1h2
            pl.BlockSpec((tile_rows, nu * c), lambda i: (i, 0)),   # gathered sym weights
            pl.BlockSpec((c, z * c), lambda i: (0, 0)),            # wmix^T (resident, bf16)
            pl.BlockSpec((c, c), lambda i: (0, 0)),                # w_m2h2 (resident, bf16)
        ],
        out_specs=pl.BlockSpec((tile_rows, c), lambda i: (i, 0)),
        compiler_params=pltpu.CompilerParams(
            dimension_semantics=("parallel",),
            vmem_limit_bytes=_VMEM_LIMIT),
    )(message_a, attrs_rep, xh2, wsym_sel, wmix_t, wm2h2)

    return node_feature_out[:n]


# ----------------------------------------------------------------------------
# Pure-JAX reference for verification (f32 throughout)
# ----------------------------------------------------------------------------

def reference_forward(params, sender, receiver, indices, node_attrs,
                      x, edge_len, edge_sph, *, avg_num_neighbors):
    n, c = x.shape
    h1p = x @ params['w_h1p']
    h = jax.nn.silu(edge_len @ params['w_r0'] + params['b_r0'])
    h = jax.nn.silu(h @ params['w_r1'] + params['b_r1']) + h
    h = jax.nn.silu(h @ params['w_r2'] + params['b_r2']) + h
    rl = h @ params['w_r3'] + params['b_r3']
    msg = edge_sph * h1p[sender] * rl
    a = jax.ops.segment_sum(msg, receiver, num_segments=n) / avg_num_neighbors
    lin_a = jnp.einsum('nc,nz,zcd->nd', a, node_attrs, params['w_mix'])
    wsel = params['w_sym'][indices].reshape(n, -1, c)
    b = jnp.zeros((n, c), jnp.float32)
    p = jnp.ones((n, c), jnp.float32)
    for v in range(wsel.shape[1]):
        p = p * lin_a
        b = b + wsel[:, v] * p
    return x @ params['w_h1h2'] + b @ params['w_m2h2']


# ----------------------------------------------------------------------------
# Main
# ----------------------------------------------------------------------------

if __name__ == "__main__":
    N, E, C, Z = 256, 2048, 128, 4       # nodes, edges, channels (128x0e), num_elements
    D_LEN, HID, NU = 8, 32, 3            # edge_length_dim, hidden, max_body_order
    AVG_NEIGH = 10.0

    keys = jax.random.split(jax.random.PRNGKey(0), 20)

    def init_w(k, shape, fan_in):
        return jax.random.normal(k, shape, jnp.float32) / math.sqrt(fan_in)

    params = dict(
        w_h1p=init_w(keys[0], (C, C), C),
        w_r0=init_w(keys[1], (D_LEN, HID), D_LEN), b_r0=0.1 * jax.random.normal(keys[15], (1, HID), jnp.float32),
        w_r1=init_w(keys[2], (HID, HID), HID),     b_r1=0.1 * jax.random.normal(keys[16], (1, HID), jnp.float32),
        w_r2=init_w(keys[3], (HID, HID), HID),     b_r2=0.1 * jax.random.normal(keys[17], (1, HID), jnp.float32),
        w_r3=init_w(keys[4], (HID, C), HID),       b_r3=0.1 * jax.random.normal(keys[18], (1, C), jnp.float32),
        w_mix=init_w(keys[5], (Z, C, C), C * Z),   # FullyConnectedTensorProduct weights
        w_sym=init_w(keys[6], (Z, NU * C), 1),     # SymmetricContraction weights
        w_h1h2=init_w(keys[7], (C, C), C),
        w_m2h2=init_w(keys[8], (C, C), C),
    )

    sender = jax.random.randint(keys[9], (E,), 0, N, dtype=jnp.int32)
    receiver = jax.random.randint(keys[10], (E,), 0, N, dtype=jnp.int32)
    indices = jax.random.randint(keys[11], (N,), 0, Z, dtype=jnp.int32)
    node_attrs = jax.nn.one_hot(indices, Z, dtype=jnp.float32)
    node_feature_in = jax.random.normal(keys[12], (N, C), jnp.float32)
    edge_length_embed = jax.random.normal(keys[13], (E, D_LEN), jnp.float32)
    edge_sph_embed = jax.random.normal(keys[14], (E, 1), jnp.float32)   # 1x0e sph embedding

    out = cueq_interaction_forward(
        params, sender, receiver, indices, node_attrs,
        node_feature_in, edge_length_embed, edge_sph_embed,
        avg_num_neighbors=AVG_NEIGH)
    out = jax.block_until_ready(out)

    ref = reference_forward(
        params, sender, receiver, indices, node_attrs,
        node_feature_in, edge_length_embed, edge_sph_embed,
        avg_num_neighbors=AVG_NEIGH)
    # bf16 MXU operands (f32 accumulation) -> relaxed tolerance vs the f32 reference.
    np.testing.assert_allclose(np.asarray(out), np.asarray(ref), rtol=5e-2, atol=5e-2)

    print("KERNEL_OK")
</pallas_src>

<mosaic_0001>
module attributes {stable_mosaic.version = 11 : i64} {
  func.func @_dual_linear_kernel(%arg0: i32, %arg1: memref<256x128xbf16, #tpu.memory_space<vmem>>, %arg2: memref<128x256xbf16, #tpu.memory_space<vmem>>, %arg3: memref<256x128xbf16, #tpu.memory_space<vmem>>, %arg4: memref<256x128xf32, #tpu.memory_space<vmem>>) attributes {dimension_semantics = [#tpu.dimension_semantics<parallel>], iteration_bounds = array<i64: 1>, scalar_prefetch = 0 : i64, scratch_operands = 0 : i64, tpu.core_type = #tpu.core_type<tc>, window_params = [{transform_indices = @transform_0, window_bounds = array<i64: 256, 128>}, {pipeline_mode = #tpu.pipeline_mode<synchronous>, transform_indices = @transform_1, window_bounds = array<i64: 128, 256>}, {transform_indices = @transform_2, window_bounds = array<i64: 256, 128>}, {transform_indices = @transform_3, window_bounds = array<i64: 256, 128>}]} {
    %c0 = arith.constant 0 : index
    %c0_0 = arith.constant 0 : index
    %0 = vector.load %arg1[%c0, %c0_0] : memref<256x128xbf16, #tpu.memory_space<vmem>>, vector<256x128xbf16>
    %c0_1 = arith.constant 0 : index
    %c0_2 = arith.constant 0 : index
    %1 = vector.load %arg2[%c0_1, %c0_2] : memref<128x256xbf16, #tpu.memory_space<vmem>>, vector<128x256xbf16>
    %cst = arith.constant dense<0.000000e+00> : vector<256x256xf32>
    %2 = tpu.matmul %0, %1, %cst {dimension_numbers = #tpu.dot_dimension_numbers<[1], [0], [0], [1], [0, 0, 1, 1], [], []>} : vector<256x128xbf16>, vector<128x256xbf16>, vector<256x256xf32> -> vector<256x256xf32>
    %3 = vector.extract_strided_slice %2 {offsets = [0, 0], sizes = [256, 128], strides = [1, 1]} : vector<256x256xf32> to vector<256x128xf32>
    %4 = arith.truncf %3 : vector<256x128xf32> to vector<256x128xbf16>
    %c0_3 = arith.constant 0 : index
    %c0_4 = arith.constant 0 : index
    %5 = vector.load %arg3[%c0_3, %c0_4] : memref<256x128xbf16, #tpu.memory_space<vmem>>, vector<256x128xbf16>
    tpu.vector_store %arg3[%c0_3, %c0_4], %4 {strides = array<i32>} : memref<256x128xbf16, #tpu.memory_space<vmem>>, vector<256x128xbf16>,
    %6 = vector.extract_strided_slice %2 {offsets = [0, 128], sizes = [256, 128], strides = [1, 1]} : vector<256x256xf32> to vector<256x128xf32>
    %c0_5 = arith.constant 0 : index
    %c0_6 = arith.constant 0 : index
    %7 = vector.load %arg4[%c0_5, %c0_6] : memref<256x128xf32, #tpu.memory_space<vmem>>, vector<256x128xf32>
    tpu.vector_store %arg4[%c0_5, %c0_6], %6 {strides = array<i32>} : memref<256x128xf32, #tpu.memory_space<vmem>>, vector<256x128xf32>,
    return
  }
  func.func @transform_0(%arg0: i32) -> (i32, i32) {
    %c0_i32 = arith.constant 0 : i32
    %c0_i32_0 = arith.constant 0 : i32
    return %arg0, %c0_i32 : i32, i32
  }
  func.func @transform_1(%arg0: i32) -> (i32, i32) {
    %c0_i32 = arith.constant 0 : i32
    %c0_i32_0 = arith.constant 0 : i32
    %c0_i32_1 = arith.constant 0 : i32
    return %c0_i32, %c0_i32_0 : i32, i32
  }
  func.func @transform_2(%arg0: i32) -> (i32, i32) {
    %c0_i32 = arith.constant 0 : i32
    %c0_i32_0 = arith.constant 0 : i32
    return %arg0, %c0_i32 : i32, i32
  }
  func.func @transform_3(%arg0: i32) -> (i32, i32) {
    %c0_i32 = arith.constant 0 : i32
    %c0_i32_0 = arith.constant 0 : i32
    return %arg0, %c0_i32 : i32, i32
  }
}

</mosaic_0001>

<bundles_post_ra>
// kernel: tpu_custom_call.1
= control target key start
LH: loop header
LB: loop body
LE: loop exit
PB: predicated region body
PF: predicated region fallthrough
CT: control target
= control target key end

     0   :  { %9 = vsyncpa [#allocation3], 0  ;;  %s1100_s0 = inlined_call_operand.hbm [shape: bf16[256,128], index: 0, kind: input, shape index: {}]   ;;  %s1101_s1 = inlined_call_operand.hbm [shape: bf16[128,256], index: 1, kind: input, shape index: {}]   ;;  %s1102_s2 = inlined_call_operand.hbm [shape: bf16[256,128], index: 2, kind: output, shape index: {0}]   ;;  %s1103_s3 = inlined_call_operand.hbm [shape: f32[256,128], index: 3, kind: output, shape index: {1}]  }
   0x1   :  { %10 = vsyncpa [#allocation6], 0 }
   0x2   :  { %11 = vsyncpa [#allocation4], 0 }
   0x3   :  { %12 = vsyncpa [#allocation9], 0  ;;  %s1031_s12 = smov [#allocation2]  }
   0x4   :  { %s18_s13 = sshll.u32 %s1031_s12, 4  ;;  %s19_s13 = int_to_ptr.vmem [resolvable:$true] %s18_s13 }
   0x5   :  { %s951_s14 = scalar_lea.vmem %s19_s13, 2048  ;;  %p956_p1 = scmp.lt.s32.totalorder %s19_s13, %s19_s13 }
   0x6   :  { %p952_p0 = scmp.ne.s32.totalorder %s19_s13, %s951_s14  ;;  %p957_p2 = scmp.lt.s32.totalorder %s951_s14, %s951_s14 }
   0x8   :  { %p958_p3 = por %p957_p2, %p956_p1 }
   0xa   :  { %p959_p4 = pnand %p958_p3, %p952_p0 }
   0xc   :  { %962 = shalt.err (!%p959_p4)
}
   0xd   :  { %s1032_s15 = smov 64   ;;  %s1033_s16 = smov 4  }
   0xe   :  { %24 = dma.hbm_to_vmem [thread:$0]  %s1100_s0, 2048, %s19_s13, [#allocation3], %s1032_s15, %s1032_s15, %s1033_s16  }
   0xf   :  { %s1034_s19 = smov [#allocation5]  }
  0x10   :  { %s30_s20 = sshll.u32 %s1034_s19, 4  ;;  %s31_s20 = int_to_ptr.vmem [resolvable:$true] %s30_s20 }
  0x11   :  { %s971_s21 = scalar_lea.vmem %s31_s20, 2048  ;;  %p976_p6 = scmp.lt.s32.totalorder %s31_s20, %s31_s20 }
  0x12   :  { %p972_p5 = scmp.ne.s32.totalorder %s31_s20, %s971_s21  ;;  %p977_p7 = scmp.lt.s32.totalorder %s971_s21, %s971_s21 }
  0x14   :  { %p978_p8 = por %p977_p7, %p976_p6 }
  0x16   :  { %p979_p9 = pnand %p978_p8, %p972_p5 }
  0x18   :  { %982 = shalt.err (!%p979_p9)
}
  0x19   :  { %s1035_s22 = smov 128   ;;  %s1036_s23 = smov 8  }
  0x1a   :  { %36 = dma.hbm_to_vmem [thread:$0]  %s1101_s1, 2048, %s31_s20, [#allocation6], %s1035_s22, %s1035_s22, %s1036_s23  }
  0x1b   :  { %1023 = dma.done.wait [#allocation3], 2048  }
  0x1c   :  { %1024 = vsyncadd [#allocation3], 4294965248 }
  0x1d   :  { %1025 = dma.done.wait [#allocation6], 2048  }
  0x1e   :  { %1026 = vsyncadd [#allocation6], 4294965248  ;;  %v1037_v0 = vmov 0   ;;  %v903_v1 = vld [vmem:[#allocation5 + $0x74] ss:$8 sps:$4 sm:$0xff]   ;;  %v927_v17 = vld [vmem:[#allocation2] sm:$0xff]  }
  0x1f   :  { %300 = vmatprep.mubr.bf16.mxu0 %v1037_v0  ;;  %380 = vmatprep.mubr.bf16.mxu1 %v1037_v0  ;;  %v905_v2 = vld [vmem:[#allocation5 + $0x70] ss:$8 sps:$4 sm:$0xff]   ;;  %v906_v3 = vld [vmem:[#allocation5 + $0x64] ss:$8 sps:$4 sm:$0xff]   ;;  %v908_v4 = vld [vmem:[#allocation5 + $0x60] ss:$8 sps:$4 sm:$0xff]  }
  0x20   :  { %268 = vmatprep.subr.bf16.mxu0 %v903_v1  ;;  %878 = vmatprep.subr.bf16.mxu1 %v903_v1  ;;  %v909_v5 = vld [vmem:[#allocation5 + $0x54] ss:$8 sps:$4 sm:$0xff]   ;;  %v911_v6 = vld [vmem:[#allocation5 + $0x50] ss:$8 sps:$4 sm:$0xff]   ;;  %v912_v7 = vld [vmem:[#allocation5 + $0x44] ss:$8 sps:$4 sm:$0xff]  }
  0x21   :  { %269 = vmatpush1.bf16.msra.mxu0 %v905_v2  ;;  %886 = vmatpush1.bf16.msra.mxu1 %v905_v2  ;;  %v914_v8 = vld [vmem:[#allocation5 + $0x40] ss:$8 sps:$4 sm:$0xff]   ;;  %v915_v9 = vld [vmem:[#allocation5 + $0x34] ss:$8 sps:$4 sm:$0xff]   ;;  %v917_v10 = vld [vmem:[#allocation5 + $0x30] ss:$8 sps:$4 sm:$0xff]  }
  0x22   :  { %270 = vmatprep.subr.bf16.mxu0 %v906_v3  ;;  %879 = vmatprep.subr.bf16.mxu1 %v906_v3  ;;  %v918_v11 = vld [vmem:[#allocation5 + $0x24] ss:$8 sps:$4 sm:$0xff]   ;;  %v920_v12 = vld [vmem:[#allocation5 + $0x20] ss:$8 sps:$4 sm:$0xff]   ;;  %v921_v13 = vld [vmem:[#allocation5 + $0x14] ss:$8 sps:$4 sm:$0xff]  }
  0x23   :  { %v923_v14 = vld [vmem:[#allocation5 + $0x10] ss:$8 sps:$4 sm:$0xff]   ;;  %v924_v15 = vld [vmem:[#allocation5 + $0x4] ss:$8 sps:$4 sm:$0xff]   ;;  %v926_v16 = vld [vmem:[#allocation5] ss:$8 sps:$4 sm:$0xff]  }
  0x24   :  { %v928_v18 = vld [vmem:[#allocation2 + $0x40] sm:$0xff]   ;;  %v929_v19 = vld [vmem:[#allocation2 + $0x8] sm:$0xff]   ;;  %v931_v21 = vld [vmem:[#allocation2 + $0x10] sm:$0xff]   ;;  %s1038_s0 = smov [#allocation7]   ;;  %s1039_s26 = smov [#allocation8]  }
  0x25   :  { %271 = vmatpush1.bf16.msra.mxu0 %v908_v4  ;;  %887 = vmatpush1.bf16.msra.mxu1 %v908_v4  ;;  %v930_v20 = vld [vmem:[#allocation2 + $0x48] sm:$0xff]   ;;  %v932_v22 = vld [vmem:[#allocation2 + $0x50] sm:$0xff]   ;;  %v933_v23 = vld [vmem:[#allocation2 + $0x18] sm:$0xff]   ;;  %s658_s1 = sshll.u32 %s1038_s0, 4  ;;  %s670_s27 = sshll.u32 %s1039_s26, 4  ;;  %s659_s1 = int_to_ptr.vmem [resolvable:$true] %s658_s1  ;;  %s671_s27 = int_to_ptr.vmem [resolvable:$true] %s670_s27 }
  0x26   :  { %272 = vmatprep.subr.bf16.mxu0 %v909_v5  ;;  %880 = vmatprep.subr.bf16.mxu1 %v909_v5  ;;  %v934_v24 = vld [vmem:[#allocation2 + $0x58] sm:$0xff]   ;;  %v935_v25 = vld [vmem:[#allocation2 + $0x20] sm:$0xff]   ;;  %v937_v27 = vld [vmem:[#allocation2 + $0x28] sm:$0xff]   ;;  %s983_s28 = scalar_lea.vmem %s659_s1, 2048  ;;  %p988_p11 = scmp.lt.s32.totalorder %s659_s1, %s659_s1 }
  0x27   :  { %v936_v26 = vld [vmem:[#allocation2 + $0x60] sm:$0xff]   ;;  %v938_v28 = vld [vmem:[#allocation2 + $0x68] sm:$0xff]   ;;  %v939_v29 = vld [vmem:[#allocation2 + $0x30] sm:$0xff]   ;;  %p984_p10 = scmp.ne.s32.totalorder %s659_s1, %s983_s28  ;;  %p989_p12 = scmp.lt.s32.totalorder %s983_s28, %s983_s28 }
  0x28   :  { %v940_v30 = vld [vmem:[#allocation2 + $0x70] sm:$0xff]   ;;  %v941_v31 = vld [vmem:[#allocation2 + $0x38] sm:$0xff]  }
  0x29   :  { %273 = vmatpush1.bf16.msra.mxu0 %v911_v6  ;;  %888 = vmatpush1.bf16.msra.mxu1 %v911_v6  ;;  %v942_v32 = vld [vmem:[#allocation2 + $0x78] sm:$0xff]   ;;  %p990_p13 = por %p989_p12, %p988_p11 }
  0x2a   :  { %274 = vmatprep.subr.bf16.mxu0 %v912_v7  ;;  %881 = vmatprep.subr.bf16.mxu1 %v912_v7 }
  0x2b   :  { %p991_p0 = pnand %p990_p13, %p984_p10 }
  0x2d   :  { %275 = vmatpush1.bf16.msra.mxu0 %v914_v8  ;;  %889 = vmatpush1.bf16.msra.mxu1 %v914_v8 }
  0x2e   :  { %276 = vmatprep.subr.bf16.mxu0 %v915_v9  ;;  %882 = vmatprep.subr.bf16.mxu1 %v915_v9 }
  0x31   :  { %277 = vmatpush1.bf16.msra.mxu0 %v917_v10  ;;  %890 = vmatpush1.bf16.msra.mxu1 %v917_v10 }
  0x32   :  { %278 = vmatprep.subr.bf16.mxu0 %v918_v11  ;;  %883 = vmatprep.subr.bf16.mxu1 %v918_v11 }
  0x35   :  { %279 = vmatpush1.bf16.msra.mxu0 %v920_v12  ;;  %891 = vmatpush1.bf16.msra.mxu1 %v920_v12 }
  0x36   :  { %280 = vmatprep.subr.bf16.mxu0 %v921_v13  ;;  %884 = vmatprep.subr.bf16.mxu1 %v921_v13 }
  0x39   :  { %281 = vmatpush1.bf16.msra.mxu0 %v923_v14  ;;  %892 = vmatpush1.bf16.msra.mxu1 %v923_v14 }
  0x3a   :  { %282 = vmatprep.subr.bf16.mxu0 %v924_v15  ;;  %885 = vmatprep.subr.bf16.mxu1 %v924_v15 }
  0x3d   :  { %283 = vmatpush1.bf16.msra.mxu0 %v926_v16  ;;  %893 = vmatpush1.bf16.msra.mxu1 %v926_v16 }
  0x40   :  { %301 = vmatmul.mubr.bf16.vlgmr.msra.gmra.mxu0 %v927_v17  ;;  %381 = vmatmul.mubr.bf16.vlgmr.msra.gmra.mxu1 %v928_v18 }
  0x41   :  { %310 = vmatprep.mubr.bf16.mxu0 %v1037_v0  ;;  %390 = vmatprep.mubr.bf16.mxu1 %v1037_v0 }
  0x48   :  { %311 = vmatmul.mubr.bf16.gmra.mxu0 %v929_v19  ;;  %391 = vmatmul.mubr.bf16.gmra.mxu1 %v930_v20 }
  0x49   :  { %320 = vmatprep.mubr.bf16.mxu0 %v1037_v0  ;;  %400 = vmatprep.mubr.bf16.mxu1 %v1037_v0 }
  0x50   :  { %321 = vmatmul.mubr.bf16.gmra.mxu0 %v931_v21  ;;  %401 = vmatmul.mubr.bf16.gmra.mxu1 %v932_v22 }
  0x51   :  { %330 = vmatprep.mubr.bf16.mxu0 %v1037_v0  ;;  %410 = vmatprep.mubr.bf16.mxu1 %v1037_v0 }
  0x58   :  { %331 = vmatmul.mubr.bf16.gmra.mxu0 %v933_v23  ;;  %411 = vmatmul.mubr.bf16.gmra.mxu1 %v934_v24 }
  0x59   :  { %340 = vmatprep.mubr.bf16.mxu0 %v1037_v0  ;;  %420 = vmatprep.mubr.bf16.mxu1 %v1037_v0 }
  0x60   :  { %341 = vmatmul.mubr.bf16.gmra.mxu0 %v935_v25  ;;  %421 = vmatmul.mubr.bf16.gmra.mxu1 %v936_v26 }
  0x61   :  { %350 = vmatprep.mubr.bf16.mxu0 %v1037_v0  ;;  %430 = vmatprep.mubr.bf16.mxu1 %v1037_v0 }
  0x68   :  { %351 = vmatmul.mubr.bf16.gmra.mxu0 %v937_v27  ;;  %431 = vmatmul.mubr.bf16.gmra.mxu1 %v938_v28 }
  0x69   :  { %360 = vmatprep.mubr.bf16.mxu0 %v1037_v0  ;;  %440 = vmatprep.mubr.bf16.mxu1 %v1037_v0 }
  0x70   :  { %361 = vmatmul.mubr.bf16.gmra.mxu0 %v939_v29  ;;  %441 = vmatmul.mubr.bf16.gmra.mxu1 %v940_v30 }
  0x71   :  { %370 = vmatprep.mubr.bf16.mxu0 %v1037_v0  ;;  %450 = vmatprep.mubr.bf16.mxu1 %v1037_v0 }
  0x78   :  { %371 = vmatmul.mubr.bf16.gmra.mxu0 %v941_v31  ;;  %451 = vmatmul.mubr.bf16.gmra.mxu1 %v942_v32 }
 0x100   :  { %v302_v33 = vpop.f32.mrf.mxu0  ;;  %v382_v34 = vpop.f32.mrf.mxu1 }
 0x102   :  { %v304_v35 = vpop.f32.mrf.mxu0  ;;  %v384_v36 = vpop.f32.mrf.mxu1 }
 0x103   :  { %621 = vst [vmem:[#allocation8] sm:$0xff] %v304_v35  ;;  %637 = vst [vmem:[#allocation8 + $0x80] sm:$0xff] %v384_v36 }
 0x104   :  { %v306_v37 = vpop.f32.mrf.mxu0  ;;  %v386_v38 = vpop.f32.mrf.mxu1 }
 0x105   :  { %v786_v39 = vpack.c.bf16 %v306_v37, %v302_v33  ;;  %v826_v40 = vpack.c.bf16 %v386_v38, %v382_v34 }
 0x106   :  { %v308_v41 = vpop.f32.mrf.mxu0  ;;  %v388_v42 = vpop.f32.mrf.mxu1 }
 0x107   :  { %787 = vst [vmem:[#allocation7] sm:$0xff] %v786_v39   ;;  %870 = vst [vmem:[#allocation7 + $0x40] sm:$0xff] %v826_v40  }
 0x108   :  { %622 = vst [vmem:[#allocation8 + $0x8] sm:$0xff] %v308_v41  ;;  %638 = vst [vmem:[#allocation8 + $0x88] sm:$0xff] %v388_v42  ;;  %v312_v43 = vpop.f32.mrf.mxu0  ;;  %v392_v44 = vpop.f32.mrf.mxu1 }
 0x10a   :  { %v314_v45 = vpop.f32.mrf.mxu0  ;;  %v394_v46 = vpop.f32.mrf.mxu1 }
 0x10b   :  { %623 = vst [vmem:[#allocation8 + $0x10] sm:$0xff] %v314_v45  ;;  %639 = vst [vmem:[#allocation8 + $0x90] sm:$0xff] %v394_v46 }
 0x10c   :  { %v316_v47 = vpop.f32.mrf.mxu0  ;;  %v396_v48 = vpop.f32.mrf.mxu1 }
 0x10d   :  { %v791_v49 = vpack.c.bf16 %v316_v47, %v312_v43  ;;  %v831_v50 = vpack.c.bf16 %v396_v48, %v392_v44 }
 0x10e   :  { %v318_v51 = vpop.f32.mrf.mxu0  ;;  %v398_v52 = vpop.f32.mrf.mxu1 }
 0x10f   :  { %863 = vst [vmem:[#allocation7 + $0x8] sm:$0xff] %v791_v49   ;;  %871 = vst [vmem:[#allocation7 + $0x48] sm:$0xff] %v831_v50  }
 0x110   :  { %624 = vst [vmem:[#allocation8 + $0x18] sm:$0xff] %v318_v51  ;;  %640 = vst [vmem:[#allocation8 + $0x98] sm:$0xff] %v398_v52  ;;  %v322_v53 = vpop.f32.mrf.mxu0  ;;  %v402_v54 = vpop.f32.mrf.mxu1 }
 0x112   :  { %v324_v55 = vpop.f32.mrf.mxu0  ;;  %v404_v56 = vpop.f32.mrf.mxu1 }
 0x113   :  { %625 = vst [vmem:[#allocation8 + $0x20] sm:$0xff] %v324_v55  ;;  %641 = vst [vmem:[#allocation8 + $0xa0] sm:$0xff] %v404_v56 }
 0x114   :  { %v326_v57 = vpop.f32.mrf.mxu0  ;;  %v406_v58 = vpop.f32.mrf.mxu1 }
 0x115   :  { %v796_v59 = vpack.c.bf16 %v326_v57, %v322_v53  ;;  %v836_v60 = vpack.c.bf16 %v406_v58, %v402_v54 }
 0x116   :  { %v328_v61 = vpop.f32.mrf.mxu0  ;;  %v408_v62 = vpop.f32.mrf.mxu1 }
 0x117   :  { %864 = vst [vmem:[#allocation7 + $0x10] sm:$0xff] %v796_v59   ;;  %872 = vst [vmem:[#allocation7 + $0x50] sm:$0xff] %v836_v60  }
 0x118   :  { %626 = vst [vmem:[#allocation8 + $0x28] sm:$0xff] %v328_v61  ;;  %642 = vst [vmem:[#allocation8 + $0xa8] sm:$0xff] %v408_v62  ;;  %v332_v63 = vpop.f32.mrf.mxu0  ;;  %v412_v0 = vpop.f32.mrf.mxu1 }
 0x11a   :  { %v334_v1 = vpop.f32.mrf.mxu0  ;;  %v414_v2 = vpop.f32.mrf.mxu1 }
 0x11b   :  { %627 = vst [vmem:[#allocation8 + $0x30] sm:$0xff] %v334_v1  ;;  %643 = vst [vmem:[#allocation8 + $0xb0] sm:$0xff] %v414_v2 }
 0x11c   :  { %v336_v3 = vpop.f32.mrf.mxu0  ;;  %v416_v4 = vpop.f32.mrf.mxu1 }
 0x11d   :  { %v801_v5 = vpack.c.bf16 %v336_v3, %v332_v63  ;;  %v841_v6 = vpack.c.bf16 %v416_v4, %v412_v0 }
 0x11e   :  { %v338_v7 = vpop.f32.mrf.mxu0  ;;  %v418_v8 = vpop.f32.mrf.mxu1 }
 0x11f   :  { %865 = vst [vmem:[#allocation7 + $0x18] sm:$0xff] %v801_v5   ;;  %873 = vst [vmem:[#allocation7 + $0x58] sm:$0xff] %v841_v6  }
 0x120   :  { %628 = vst [vmem:[#allocation8 + $0x38] sm:$0xff] %v338_v7  ;;  %644 = vst [vmem:[#allocation8 + $0xb8] sm:$0xff] %v418_v8  ;;  %v342_v9 = vpop.f32.mrf.mxu0  ;;  %v422_v10 = vpop.f32.mrf.mxu1 }
 0x122   :  { %v344_v11 = vpop.f32.mrf.mxu0  ;;  %v424_v12 = vpop.f32.mrf.mxu1 }
 0x123   :  { %629 = vst [vmem:[#allocation8 + $0x40] sm:$0xff] %v344_v11  ;;  %645 = vst [vmem:[#allocation8 + $0xc0] sm:$0xff] %v424_v12 }
 0x124   :  { %v346_v13 = vpop.f32.mrf.mxu0  ;;  %v426_v14 = vpop.f32.mrf.mxu1 }
 0x125   :  { %v806_v15 = vpack.c.bf16 %v346_v13, %v342_v9  ;;  %v846_v16 = vpack.c.bf16 %v426_v14, %v422_v10 }
 0x126   :  { %v348_v17 = vpop.f32.mrf.mxu0  ;;  %v428_v18 = vpop.f32.mrf.mxu1 }
 0x127   :  { %866 = vst [vmem:[#allocation7 + $0x20] sm:$0xff] %v806_v15   ;;  %874 = vst [vmem:[#allocation7 + $0x60] sm:$0xff] %v846_v16  }
 0x128   :  { %630 = vst [vmem:[#allocation8 + $0x48] sm:$0xff] %v348_v17  ;;  %646 = vst [vmem:[#allocation8 + $0xc8] sm:$0xff] %v428_v18  ;;  %v352_v19 = vpop.f32.mrf.mxu0  ;;  %v432_v20 = vpop.f32.mrf.mxu1 }
 0x12a   :  { %v354_v21 = vpop.f32.mrf.mxu0  ;;  %v434_v22 = vpop.f32.mrf.mxu1 }
 0x12b   :  { %631 = vst [vmem:[#allocation8 + $0x50] sm:$0xff] %v354_v21  ;;  %647 = vst [vmem:[#allocation8 + $0xd0] sm:$0xff] %v434_v22 }
 0x12c   :  { %v356_v23 = vpop.f32.mrf.mxu0  ;;  %v436_v24 = vpop.f32.mrf.mxu1 }
 0x12d   :  { %v811_v25 = vpack.c.bf16 %v356_v23, %v352_v19  ;;  %v851_v26 = vpack.c.bf16 %v436_v24, %v432_v20 }
 0x12e   :  { %v358_v27 = vpop.f32.mrf.mxu0  ;;  %v438_v28 = vpop.f32.mrf.mxu1 }
 0x12f   :  { %867 = vst [vmem:[#allocation7 + $0x28] sm:$0xff] %v811_v25   ;;  %875 = vst [vmem:[#allocation7 + $0x68] sm:$0xff] %v851_v26  }
 0x130   :  { %632 = vst [vmem:[#allocation8 + $0x58] sm:$0xff] %v358_v27  ;;  %648 = vst [vmem:[#allocation8 + $0xd8] sm:$0xff] %v438_v28  ;;  %v362_v29 = vpop.f32.mrf.mxu0  ;;  %v442_v30 = vpop.f32.mrf.mxu1 }
 0x132   :  { %v364_v31 = vpop.f32.mrf.mxu0  ;;  %v444_v32 = vpop.f32.mrf.mxu1 }
 0x133   :  { %633 = vst [vmem:[#allocation8 + $0x60] sm:$0xff] %v364_v31  ;;  %649 = vst [vmem:[#allocation8 + $0xe0] sm:$0xff] %v444_v32 }
 0x134   :  { %v366_v33 = vpop.f32.mrf.mxu0  ;;  %v446_v34 = vpop.f32.mrf.mxu1 }
 0x135   :  { %v816_v35 = vpack.c.bf16 %v366_v33, %v362_v29  ;;  %v856_v36 = vpack.c.bf16 %v446_v34, %v442_v30 }
 0x136   :  { %v368_v37 = vpop.f32.mrf.mxu0  ;;  %v448_v38 = vpop.f32.mrf.mxu1 }
 0x137   :  { %868 = vst [vmem:[#allocation7 + $0x30] sm:$0xff] %v816_v35   ;;  %876 = vst [vmem:[#allocation7 + $0x70] sm:$0xff] %v856_v36  }
 0x138   :  { %634 = vst [vmem:[#allocation8 + $0x68] sm:$0xff] %v368_v37  ;;  %650 = vst [vmem:[#allocation8 + $0xe8] sm:$0xff] %v448_v38  ;;  %v372_v39 = vpop.f32.mrf.mxu0  ;;  %v452_v40 = vpop.f32.mrf.mxu1 }
 0x13a   :  { %v374_v41 = vpop.f32.mrf.mxu0  ;;  %v454_v42 = vpop.f32.mrf.mxu1 }
 0x13b   :  { %635 = vst [vmem:[#allocation8 + $0x70] sm:$0xff] %v374_v41  ;;  %651 = vst [vmem:[#allocation8 + $0xf0] sm:$0xff] %v454_v42 }
 0x13c   :  { %v376_v43 = vpop.f32.mrf.mxu0  ;;  %v456_v44 = vpop.f32.mrf.mxu1 }
 0x13d   :  { %v821_v45 = vpack.c.bf16 %v376_v43, %v372_v39  ;;  %v861_v46 = vpack.c.bf16 %v456_v44, %v452_v40 }
 0x13e   :  { %v378_v47 = vpop.f32.mrf.mxu0  ;;  %v458_v48 = vpop.f32.mrf.mxu1 }
 0x13f   :  { %869 = vst [vmem:[#allocation7 + $0x38] sm:$0xff] %v821_v45   ;;  %877 = vst [vmem:[#allocation7 + $0x78] sm:$0xff] %v861_v46  }
 0x140   :  { %636 = vst [vmem:[#allocation8 + $0x78] sm:$0xff] %v378_v47  ;;  %652 = vst [vmem:[#allocation8 + $0xf8] sm:$0xff] %v458_v48 }
 0x141   :  { %994 = shalt.err (!%p991_p0)
}
 0x142   :  { %664 = dma.vmem_to_hbm [thread:$0]  %s659_s1, 2048, %s1102_s2, [#allocation4], %s1032_s15, %s1032_s15, %s1033_s16  }
 0x143   :  { %s1003_s4 = scalar_lea.vmem %s671_s27, 4096  ;;  %p1008_p2 = scmp.lt.s32.totalorder %s671_s27, %s671_s27 }
 0x144   :  { %p1004_p1 = scmp.ne.s32.totalorder %s671_s27, %s1003_s4  ;;  %p1009_p3 = scmp.lt.s32.totalorder %s1003_s4, %s1003_s4 }
 0x146   :  { %p1010_p4 = por %p1009_p3, %p1008_p2 }
 0x148   :  { %p1011_p5 = pnand %p1010_p4, %p1004_p1 }
 0x14a   :  { %1014 = shalt.err (!%p1011_p5)
}
 0x14b   :  { %676 = dma.vmem_to_hbm [thread:$0]  %s671_s27, 4096, %s1103_s3, [#allocation9], %s1035_s22, %s1035_s22, %s1036_s23  }
 0x14c   :  { %1027 = dma.done.wait [#allocation4], 2048  }
 0x14d   :  { %1028 = vsyncadd [#allocation4], 4294965248 }
 0x14e   :  { %1029 = dma.done.wait [#allocation9], 4096  }
 0x14f   :  { %1030 = vsyncadd [#allocation9], 4294963200 }
 0x150   :  { %683 = vsyncpa [#allocation3], 1 }
 0x151   :  { %684 = vsyncpa [#allocation6], 1 }
 0x152   :  { %685 = vsyncpa [#allocation4], 1 }
 0x153   :  { %686 = vsyncpa [#allocation9], 1 }

</bundles_post_ra>
